<compile_context>
chip_gen: v6e
topology: v6e:2x2x1
jax: 0.10.0
libtpu: 0.0.40
codegen_flags: <defaults>
</compile_context>

<pallas_src>
import jax
import jax.numpy as jnp
from jax.experimental import pallas as pl
from jax.experimental.pallas import tpu as pltpu


def _expand_node_kernel(x_ref, o_ref):
    # x_ref: (TN, C)   o_ref: (2, TN, C)
    x = x_ref[...]
    o_ref[0] = x                   # real part: straight copy
    o_ref[1] = jnp.zeros_like(x)   # imaginary part: zero fill


def _sublane_multiple(dtype) -> int:
    # Sublane packing granularity: f32 -> 8, bf16/f16 -> 16, int8/fp8 -> 32.
    return {4: 8, 2: 16, 1: 32}.get(jnp.dtype(dtype).itemsize, 8)


def _round_up(x: int, m: int) -> int:
    return ((x + m - 1) // m) * m


def _cdiv(a: int, b: int) -> int:
    return -(-a // b)


def _tpu_vmem_capacity_bytes() -> int:
    """Best-effort query of per-TensorCore VMEM capacity."""
    try:
        info = pltpu.get_tpu_info()
        for attr in ("vmem_capacity_bytes", "vmem_size_bytes", "vmem_bytes"):
            v = getattr(info, attr, None)
            if v:
                return int(v)
    except Exception:
        pass
    # Conservative fallback: assume v7x-class (64 MiB per TC).
    return 64 * 1024 * 1024


def _gen_params():
    """Per-generation tiling parameters (single code path, per review)."""
    vmem = _tpu_vmem_capacity_bytes()
    if vmem >= 96 * 1024 * 1024:
        # v5e / v6e: 128 MiB physical VMEM, single TensorCore per chip.
        # Double-buffered footprint is ~3x the output-tile target (in = T/2,
        # out = T), so 16 MiB tiles -> ~48 MiB: raise the scoped VMEM limit
        # explicitly (v5e default is only 16 MiB, v6e 32 MiB).
        return dict(target_out_bytes=16 * 1024 * 1024,
                    vmem_limit_bytes=64 << 20,
                    min_grid=1)
    # v7x-class: 64 MiB physical per TC, 2 TCs per chip.  8 MiB tiles keep the
    # ~24 MiB footprint inside the 32 MiB scoped limit; min_grid=4 keeps both
    # TensorCores fed through the "parallel" grid axis.
    return dict(target_out_bytes=8 * 1024 * 1024,
                vmem_limit_bytes=32 << 20,
                min_grid=4)


def _choose_block_rows(n_rows: int, n_cols: int, dtype,
                       target_out_bytes: int, min_grid: int) -> int:
    itemsize = jnp.dtype(dtype).itemsize
    sub = _sublane_multiple(dtype)
    # Size the (2, block, cols) output tile to ~target_out_bytes.
    block = target_out_bytes // max(1, 2 * n_cols * itemsize)
    block = max(sub, (block // sub) * sub)
    if min_grid > 1:
        # Cap so grid = cdiv(rows, block) >= min_grid (megacore sharding).
        cap = max(sub, _round_up(_cdiv(n_rows, min_grid), sub))
        block = min(block, cap)
    # Minimal-overhang clamp for small row counts.
    block = min(block, _round_up(n_rows, sub))
    return block


_SMALL_BYTES = 64 * 1024  # below this, fused XLA stack/zeros beats a kernel launch
_LANES = 128


def expand_node_layer(node_features, is_complex: bool = False, *,
                      block_rows=None, input_buffer_count=None,
                      force_kernel: bool = False):
    """JAX/Pallas equivalent of pygelib ExpandNodeLayer.forward.

    Returns a list with a single array of shape (2, N, 1, C), mimicking
    SO3VecArray([...]) with a single l=0 fragment.
    """
    if is_complex:
        # Input already carries the complex (2, ...) leading axis; forward is a
        # pure unsqueeze(-2): no compute, no kernel needed.
        return [node_features[..., None, :]]

    n, c = node_features.shape
    dtype = node_features.dtype
    itemsize = jnp.dtype(dtype).itemsize

    # Tiny-input fallback: pallas_call launch + DMA setup would dominate.
    if not force_kernel and n * c * itemsize < _SMALL_BYTES:
        out = jnp.stack([node_features, jnp.zeros_like(node_features)], axis=0)
        return [out[:, :, None, :]]

    # Lane-dense view: pure copy + zero fill => free to repack the 2D view so
    # the output last dim is a multiple of 128 (unmasked full-lane stores).
    pad = 0
    if c % _LANES == 0:
        rows, cols = n, c
        x2d = node_features
    else:
        flat = node_features.reshape(-1)
        pad = (-flat.shape[0]) % _LANES
        if pad:
            # TODO(synk): this materializes a padded copy in the wrapper for
            # awkward shapes; fusing into the consumer avoids it entirely.
            flat = jnp.concatenate([flat, jnp.zeros((pad,), dtype=dtype)])
        rows, cols = flat.shape[0] // _LANES, _LANES
        x2d = flat.reshape(rows, cols)

    gen = _gen_params()
    sub = _sublane_multiple(dtype)
    if block_rows is None:
        block = _choose_block_rows(rows, cols, dtype,
                                   gen["target_out_bytes"], gen["min_grid"])
    else:
        block = max(sub, (int(block_rows) // sub) * sub)

    in_spec_kwargs = {}
    if input_buffer_count is not None:
        # Sweepable: deeper input buffering if xprof shows exposed DMA gaps.
        in_spec_kwargs["pipeline_mode"] = pl.Buffered(int(input_buffer_count))

    out2d = pl.pallas_call(
        _expand_node_kernel,
        out_shape=jax.ShapeDtypeStruct((2, rows, cols), dtype),
        grid_spec=pltpu.PrefetchScalarGridSpec(
            num_scalar_prefetch=0,
            grid=(pl.cdiv(rows, block),),
            in_specs=[pl.BlockSpec((block, cols), lambda i: (i, 0),
                                   **in_spec_kwargs)],
            out_specs=pl.BlockSpec((2, block, cols), lambda i: (0, i, 0)),
        ),
        compiler_params=pltpu.CompilerParams(
            # v7x: shard node tiles across both TensorCores; harmless on v5e/v6e.
            dimension_semantics=("parallel",),
            vmem_limit_bytes=gen["vmem_limit_bytes"],
        ),
        cost_estimate=pl.CostEstimate(
            flops=0, transcendentals=0,
            bytes_accessed=3 * rows * cols * itemsize),
    )(x2d)

    # Undo the flat/padded view and add the tau=1 axis (free metadata ops).
    if pad or cols != c:
        out = out2d.reshape(2, rows * cols)[:, : n * c].reshape(2, n, c)
    else:
        out = out2d
    # TODO(synk): SO3VecArray container is represented as a plain Python list.
    return [out[:, :, None, :]]


if __name__ == "__main__":
    key = jax.random.PRNGKey(0)
    keys = jax.random.split(key, 6)

    def ref(x):
        return jnp.stack([x, jnp.zeros_like(x)], axis=0)[:, :, None, :]

    # 1) Default path at a small shape -> tiny-input XLA fallback.
    x1 = jax.random.normal(keys[0], (64, 32), dtype=jnp.float32)
    o1 = expand_node_layer(x1)[0]
    jax.block_until_ready(o1)
    assert o1.shape == (2, 64, 1, 32), o1.shape
    assert jnp.array_equal(o1, ref(x1)), "mismatch (small fallback path)"

    # 2) Kernel path, narrow C flattened to a lane-dense (16, 128) view.
    o2 = expand_node_layer(x1, force_kernel=True)[0]
    jax.block_until_ready(o2)
    assert o2.shape == (2, 64, 1, 32), o2.shape
    assert jnp.array_equal(o2, ref(x1)), "mismatch (narrow-C flatten path)"

    # 3) Kernel path, C > 128 but not a multiple of 128: flattened to (40, 128).
    x3 = jax.random.normal(keys[1], (32, 160), dtype=jnp.float32)
    o3 = expand_node_layer(x3, force_kernel=True)[0]
    jax.block_until_ready(o3)
    assert o3.shape == (2, 32, 1, 160), o3.shape
    assert jnp.array_equal(o3, ref(x3)), "mismatch (wide non-128 C path)"

    # 4) Kernel path, N*C not a multiple of 128: padded flat view + slice back.
    x4 = jax.random.normal(keys[2], (50, 30), dtype=jnp.float32)
    o4 = expand_node_layer(x4, force_kernel=True)[0]
    jax.block_until_ready(o4)
    assert o4.shape == (2, 50, 1, 30), o4.shape
    assert jnp.array_equal(o4, ref(x4)), "mismatch (padded flatten path)"

    # 5) Kernel path, C multiple of 128, explicit small block -> multiple grid
    #    steps with a partial last tile (block clipping).
    x5 = jax.random.normal(keys[3], (44, 128), dtype=jnp.float32)
    o5 = expand_node_layer(x5, force_kernel=True, block_rows=8)[0]
    jax.block_until_ready(o5)
    assert o5.shape == (2, 44, 1, 128), o5.shape
    assert jnp.array_equal(o5, ref(x5)), "mismatch (multi-step / partial tile)"

    # 6) bf16 dtype through the kernel path (sublane multiple 16).
    x6 = jax.random.normal(keys[4], (64, 32), dtype=jnp.float32).astype(jnp.bfloat16)
    o6 = expand_node_layer(x6, force_kernel=True)[0]
    jax.block_until_ready(o6)
    assert o6.shape == (2, 64, 1, 32), o6.shape
    assert jnp.array_equal(o6, ref(x6)), "mismatch (bf16 path)"

    # 7) is_complex path: pure unsqueeze(-2), no kernel.
    x7 = jax.random.normal(keys[5], (2, 8, 16), dtype=jnp.float32)
    o7 = expand_node_layer(x7, is_complex=True)[0]
    jax.block_until_ready(o7)
    assert o7.shape == (2, 8, 1, 16), o7.shape
    assert jnp.array_equal(o7, x7[:, :, None, :]), "mismatch (is_complex path)"

    print("KERNEL_OK")
</pallas_src>

<mosaic_0001>
module attributes {stable_mosaic.version = 11 : i64} {
  func.func @_expand_node_kernel(%arg0: i32, %arg1: memref<8x128xf32, #tpu.memory_space<vmem>>, %arg2: memref<2x8x128xf32, #tpu.memory_space<vmem>>) attributes {dimension_semantics = [#tpu.dimension_semantics<parallel>], iteration_bounds = array<i64: 2>, scalar_prefetch = 0 : i64, scratch_operands = 0 : i64, tpu.core_type = #tpu.core_type<tc>, window_params = [{transform_indices = @transform_0, window_bounds = array<i64: 8, 128>}, {transform_indices = @transform_1, window_bounds = array<i64: 2, 8, 128>}]} {
    %c0 = arith.constant 0 : index
    %c0_0 = arith.constant 0 : index
    %0 = vector.load %arg1[%c0, %c0_0] : memref<8x128xf32, #tpu.memory_space<vmem>>, vector<8x128xf32>
    %c0_1 = arith.constant 0 : index
    %c0_2 = arith.constant 0 : index
    %c0_3 = arith.constant 0 : index
    %1 = vector.load %arg2[%c0_1, %c0_2, %c0_3] : memref<2x8x128xf32, #tpu.memory_space<vmem>>, vector<1x8x128xf32>
    %2 = vector.shape_cast %1 : vector<1x8x128xf32> to vector<8x128xf32>
    %3 = vector.shape_cast %0 : vector<8x128xf32> to vector<1x8x128xf32>
    tpu.vector_store %arg2[%c0_1, %c0_2, %c0_3], %3 {strides = array<i32>} : memref<2x8x128xf32, #tpu.memory_space<vmem>>, vector<1x8x128xf32>,
    %cst = arith.constant 0.000000e+00 : f32
    %4 = vector.broadcast %cst : f32 to vector<8x128xf32>
    %c1 = arith.constant 1 : index
    %c0_4 = arith.constant 0 : index
    %c0_5 = arith.constant 0 : index
    %5 = vector.load %arg2[%c1, %c0_4, %c0_5] : memref<2x8x128xf32, #tpu.memory_space<vmem>>, vector<1x8x128xf32>
    %6 = vector.shape_cast %5 : vector<1x8x128xf32> to vector<8x128xf32>
    %7 = vector.shape_cast %4 : vector<8x128xf32> to vector<1x8x128xf32>
    tpu.vector_store %arg2[%c1, %c0_4, %c0_5], %7 {strides = array<i32>} : memref<2x8x128xf32, #tpu.memory_space<vmem>>, vector<1x8x128xf32>,
    return
  }
  func.func @transform_0(%arg0: i32) -> (i32, i32) {
    %c0_i32 = arith.constant 0 : i32
    %c0_i32_0 = arith.constant 0 : i32
    return %arg0, %c0_i32 : i32, i32
  }
  func.func @transform_1(%arg0: i32) -> (i32, i32, i32) {
    %c0_i32 = arith.constant 0 : i32
    %c0_i32_0 = arith.constant 0 : i32
    %c0_i32_1 = arith.constant 0 : i32
    return %c0_i32, %arg0, %c0_i32_0 : i32, i32, i32
  }
}

</mosaic_0001>

<bundles_post_ra>
// kernel: tpu_custom_call.1
= control target key start
LH: loop header
LB: loop body
LE: loop exit
PB: predicated region body
PF: predicated region fallthrough
CT: control target
= control target key end

     0   :  { %6 = vsyncpa [#allocation3], 0  ;;  %s551_s0 = inlined_call_operand.hbm [shape: f32[16,128], index: 0, kind: input, shape index: {}]   ;;  %s552_s1 = inlined_call_operand.hbm [shape: f32[2,16,128], index: 1, kind: output, shape index: {}]  }
   0x1   :  { %8 = vsyncpa [#allocation3 + $0x1], 0 }
   0x2   :  { %9 = vsyncpa [#allocation4], 0 }
   0x3   :  { %11 = vsyncpa [#allocation4 + $0x1], 0  ;;  %s395_s6 = smov 0   ;;  %s397_s7 = smov 0  }
   0x4   :  { %s399_s8 = smov 0   ;;  %s401_s9 = smov 0  }
   0x5 LB: > { %s416_s10 = sadd.s32 4294967295, %s377_s9   ;;  %s222_s11 = sadd.s32 4294967294, %s377_s9   ;;  %s377_s9 = sphi %s401_s9, %s569_s9   ;;  %s373_s8 = sphi %s399_s8, %s568_s8   ;;  %s369_s7 = sphi %s397_s7, %s567_s7   ;;  %s365_s6 = sphi %s395_s6, %s566_s6  }
   0x6   : > { %s420_s12 = sadd.s32 1, %s377_s9   ;;  %s24_s13 = sadd.s32 1, %s373_s8 }
   0x7   : > { %s21_s14 = ssub.s32 %s377_s9, %s420_s12  ;;  %p31_p0 = scmp.ne.s32.totalorder %s373_s8, %s369_s7 }
   0x8   : > { %p22_p1 = scmp.eq.s32.totalorder %s21_s14, 0  ;;  %p32_p2 = scmp.eq.s32.totalorder %s377_s9, 0 }
   0x9   : > { %p37_p3 = scmp.ne.s32.totalorder %s369_s7, %s365_s6  ;;  %p38_p4 = scmp.eq.s32.totalorder %s416_s10, 0 }
   0xa   : > { %s432_s15 = scalar_select %p22_p1, %s373_s8, %s24_s13  }
   0xb   : > { %p434_p5 = por %p32_p2, %p31_p0  ;;  %p438_p6 = por %p38_p4, %p37_p3 }
   0xc   : > { %p61_p7 = scmp.eq.s32.totalorder %s416_s10, 1  ;;  %p67_p8 = scmp.eq.s32.totalorder %s222_s11, 1 }
   0xd   : > { %s556_s17 = scalar_select %p438_p6, 1, 0 }
   0xe   : > { %p247_p10 = scmp.lt.s32.totalorder %s377_s9, 2  ;;  %p445_p11 = por %p61_p7, %p31_p0 }
   0xf   : > { %p449_p12 = por %p67_p8, %p37_p3  ;;  %s87_s20 = sand.u32 1, %s373_s8  }
  0x10   : > { %s557_s18 = scalar_select %p445_p11, 1, 0 }
  0x11   : > { %s558_s19 = scalar_select %p449_p12, 1, 0 }
  0x12   : > { %s226_s21 = sshll.u32 %s377_s9, 7  ;;  %s225_s22 = sshll.u32 %s87_s20, 3 }
  0x13   : > { %s458_s25 = scalar_lea.hbm %s551_s0, %s226_s21  ;;  %s91_s26 = scalar_lea.vmem [#allocation2], %s225_s22 }
  0x14   : > { %s98_s27 = sshll.u32 %s91_s26, 4  ;;  %p462_p13 = pnand %p247_p10, %p434_p5  ;;  %s466_s27 = int_to_ptr.vmem [resolvable:$true] %s98_s27 }
  0x15   : > { %s88_s29 = scalar_lea.sflag [#allocation3], %s87_s20  ;;  %s285_s30 = scalar_lea.hbm %s458_s25, 128 }
  0x16   : > { %p286_p2 = scmp.ne.s32.totalorder %s458_s25, %s285_s30  ;;  %p287_p3 = pneg %p462_p13 }
  0x17   : > { %s290_s4 = scalar_lea.hbm %s551_s0, 256  ;;  %p291_p5 = scmp.lt.s32.totalorder %s458_s25, %s551_s0 }
  0x18   : > { %p288_p4 = pnand %p287_p3, %p286_p2  ;;  %p292_p8 = scmp.lt.s32.totalorder %s290_s4, %s285_s30 }
  0x1a   : > { %p289_p7 = pneg %p288_p4  ;;  %p293_p10 = por %p292_p8, %p291_p5 }
  0x1c   : > { %p294_p9 = pnand %p293_p10, %p289_p7 }
  0x1e   : > { %297 = shalt.err (!%p294_p9)
}
  0x1f   : > { %s298_s13 = scalar_lea.vmem %s466_s27, 128  ;;  %s379_s14 = smov [#allocation2]  }
  0x20   : > { %p299_p0 = scmp.ne.s32.totalorder %s466_s27, %s298_s13  ;;  %s303_s16 = sshll.u32 %s379_s14, 4  ;;  %s304_s16 = int_to_ptr.vmem [resolvable:$false] %s303_s16 }
  0x21   : > { %s305_s20 = scalar_lea.vmem %s304_s16, 256  ;;  %p306_p4 = scmp.lt.s32.totalorder %s466_s27, %s304_s16 }
  0x22   : > { %p301_p1 = pnand %p299_p0, %p287_p3  ;;  %p307_p12 = scmp.lt.s32.totalorder %s305_s20, %s298_s13 }
  0x24   : > { %p302_p2 = pneg %p301_p1  ;;  %p308_p11 = por %p307_p12, %p306_p4 }
  0x26   : > { %p309_p6 = pnand %p308_p11, %p302_p2 }
  0x28   : > { %312 = shalt.err (!%p309_p6)
}
  0x29   : > { %242 = dma.hbm_to_vmem [thread:$0]  (!%p462_p13), %s458_s25, 128, %s466_s27, %s88_s29  }
  0x2a   : > { %p560_p9 = scmp.lt.s32.totalorder %s377_s9, 3  ;;  %p561_p7 = scmp.ge.s32.totalorder %s377_s9, 1 }
  0x2c   : > { %p104_p0 = pnand %p561_p7, %p560_p9 }
  0x2d   : > { %s493_s21 = sand.u32 (!%p104_p0), 1, %s369_s7   ;;  %p562_p6 = scmp.ne.s32.totalorder (!%p104_p0), %s556_s17, 0 }
  0x2e   : > { %107 = sbr.rel (%p104_p0) target bundleno = 79 (0x4f), region = 24  ;;  %s228_s22 = sshll.u32 (!%p104_p0), %s493_s21, 3 }
  0x2f   : > { %s110_s23 = scalar_lea.sflag (!%p104_p0), [#allocation3], %s493_s21  ;;  %s113_s24 = scalar_lea.vmem (!%p104_p0), [#allocation2], %s228_s22 }
  0x33   : > { %356 = dma.done.wait (%p562_p6), %s110_s23, 128  }
  0x34   : > { %358 = vsyncadd (%p562_p6), %s110_s23, 4294967168  ;;  %s229_s25 = sshll.u32 %s493_s21, 4  ;;  %s232_s26 = sshll.u32 %s416_s10, 7  ;;  %v380_v0 = vmov 0.0   ;;  %v132_v1 = vld [vmem:[%s113_s24] sm:$0xff] }
  0x35   : > { %s131_s27 = scalar_lea.vmem [#allocation5], %s229_s25  ;;  %s506_s2 = scalar_lea.hbm %s552_s1, %s232_s26 }
  0x36   : > { %s149_s28 = sshll.u32 %s131_s27, 4  ;;  %230 = vst [vmem:[%s131_s27 + $0x8] sm:$0xff] %v380_v0  ;;  %133 = vst [vmem:[%s131_s27] sm:$0xff] %v132_v1  ;;  %s137_s17 = scalar_lea.sflag [#allocation4], %s493_s21  ;;  %s508_s28 = int_to_ptr.vmem [resolvable:$true] %s149_s28 }
  0x37   : > { %s313_s3 = scalar_lea.vmem %s508_s28, 256  ;;  %p563_p12 = scmp.ne.s32.totalorder %s557_s18, 0 }
  0x38   : > { %p314_p11 = scmp.ne.s32.totalorder %s508_s28, %s313_s3  ;;  %s381_s10 = smov [#allocation5]  }
  0x39   : > { %s317_s4 = sshll.u32 %s381_s10, 4  ;;  %s318_s4 = int_to_ptr.vmem [resolvable:$false] %s317_s4 }
  0x3a   : > { %p315_p13 = pnand %p314_p11, %p563_p12  ;;  %s319_s5 = scalar_lea.vmem %s318_s4, 512 }
  0x3b   : > { %p320_p3 = scmp.lt.s32.totalorder %s508_s28, %s318_s4  ;;  %p321_p5 = scmp.lt.s32.totalorder %s319_s5, %s313_s3 }
  0x3c   : > { %p316_p1 = pneg %p315_p13 }
  0x3d   : > { %p322_p8 = por %p321_p5, %p320_p3 }
  0x3f   : > { %p323_p10 = pnand %p322_p8, %p316_p1 }
  0x41   : > { %326 = shalt.err (!%p323_p10)
}
  0x42   : > { %s327_s11 = scalar_lea.hbm %s506_s2, 256  ;;  %s331_s16 = scalar_lea.hbm %s552_s1, 512 }
  0x43   : > { %p328_p2 = scmp.ne.s32.totalorder %s506_s2, %s327_s11  ;;  %p332_p7 = scmp.lt.s32.totalorder %s506_s2, %s552_s1 }
  0x44   : > { %p333_p0 = scmp.lt.s32.totalorder %s331_s16, %s327_s11 }
  0x45   : > { %p329_p4 = pnand %p328_p2, %p563_p12 }
  0x46   : > { %p334_p6 = por %p333_p0, %p332_p7 }
  0x47   : > { %p330_p9 = pneg %p329_p4 }
  0x49   : > { %p335_p11 = pnand %p334_p6, %p330_p9 }
  0x4b   : > { %338 = shalt.err (!%p335_p11)
}
  0x4c   : > { %s382_s23 = smov 128   ;;  %s383_s24 = smov 256  }
  0x4d   : > { %s384_s25 = smov 8  }
  0x4e   : > { %237 = dma.vmem_to_hbm [thread:$0]  (%p563_p12), %s508_s28, 256, %s506_s2, %s137_s17, %s382_s23, %s383_s24, %s384_s25  }
  0x4f PF: > { %s164_s26 = sand.u32 1, %s365_s6   ;;  %p564_p13 = scmp.ne.s32.totalorder %s558_s19, 0 }
  0x50   : > { %p565_p1 = scmp.ge.s32.totalorder %s377_s9, 2  ;;  %s165_s27 = scalar_lea.sflag [#allocation4], %s164_s26 }
  0x52   : > { %p244_p3 = pnand %p565_p1, %p564_p13 }
  0x54   : > { %p245_p5 = pneg %p244_p3 }
  0x56   : > { %360 = dma.done.wait (%p245_p5), %s165_s27, 256  }
  0x57   : > { %362 = vsyncadd (%p245_p5), %s165_s27, 4294967040  ;;  %p14_p8 = scmp.ge.s32.totalorder %s420_s12, 4   ;;  %s566_s6 = smov %s369_s7 }
  0x58   : > { %s567_s7 = smov %s373_s8  ;;  %s568_s8 = smov %s432_s15 }
  0x59   : > { %s569_s9 = smov %s420_s12  ;;  %16 = sbr.rel (!%p14_p8) target bundleno = 5 (0x5), region = 70 }
  0x5e   :  { %170 = vsyncpa [#allocation3], 1 }
  0x5f   :  { %172 = vsyncpa [#allocation3 + $0x1], 1 }
  0x60   :  { %173 = vsyncpa [#allocation4], 1 }
  0x61   :  { %175 = vsyncpa [#allocation4 + $0x1], 1 }

</bundles_post_ra>
